<compile_context>
chip_gen: v6e
topology: v6e:2x2x1
jax: 0.10.0
libtpu: 0.0.40
codegen_flags: <defaults>
</compile_context>

<pallas_src>
import jax
import jax.numpy as jnp
from jax.experimental import pallas as pl
from jax.experimental.pallas import tpu as pltpu


def _round_up(v, m):
    return ((v + m - 1) // m) * m


def _pick_tile(dim, candidates):
    """Largest candidate tile that exactly divides `dim`."""
    for c in candidates:
        if c <= dim and dim % c == 0:
            return c
    return dim


def _vmem_limit_bytes():
    """~3/4 of this generation's physical VMEM, capped at 100 MiB."""
    cap = 64 * 1024 * 1024
    try:
        info = pltpu.get_tpu_info()
        cap = int(getattr(info, "vmem_capacity_bytes", cap))
    except Exception:
        pass
    return min(100 * 1024 * 1024, (cap * 3) // 4)


_HAS_BUFFERED = hasattr(pl, "Buffered")


def _in_spec(shape, index_map, nbuf=2):
    """BlockSpec with optional deeper pipelining (falls back to default)."""
    if _HAS_BUFFERED and nbuf > 2:
        try:
            return pl.BlockSpec(shape, index_map, pipeline_mode=pl.Buffered(nbuf))
        except TypeError:
            pass
    return pl.BlockSpec(shape, index_map)


# -----------------------------------------------------------------------------
# Kernels
# -----------------------------------------------------------------------------
def _mm_bias_small_kernel(w_ref, x_ref, b_ref, o_ref):
    # Tiny problem: whole (unpadded) operands resident in VMEM, one MXU matmul.
    acc = jnp.dot(w_ref[...], x_ref[...], preferred_element_type=jnp.float32)
    o_ref[...] = (acc + b_ref[...]).astype(o_ref.dtype)


def _make_tiled_kernel(mxu_dtype, acc_into_out):
    """3-axis tiled matmul kernel.  f32 accumulation; bias on the last k step.

    mxu_dtype:    if not None, cast the w/x tiles to this dtype before the dot
                  (bf16 MXU fast path; accumulation stays f32).
    acc_into_out: accumulate directly into the resident f32 output block
                  (no scratch, no epilogue copy).
    """
    if acc_into_out:

        def kernel(w_ref, x_ref, b_ref, o_ref):
            k = pl.program_id(2)

            @pl.when(k == 0)
            def _():
                o_ref[...] = jnp.zeros_like(o_ref)

            a = w_ref[...]
            c = x_ref[...]
            if mxu_dtype is not None:
                a = a.astype(mxu_dtype)
                c = c.astype(mxu_dtype)
            o_ref[...] += jnp.dot(a, c, preferred_element_type=jnp.float32)

            @pl.when(k == pl.num_programs(2) - 1)
            def _():
                o_ref[...] += b_ref[...].astype(jnp.float32)

        return kernel

    def kernel(w_ref, x_ref, b_ref, o_ref, acc_ref):
        k = pl.program_id(2)

        @pl.when(k == 0)
        def _():
            acc_ref[...] = jnp.zeros_like(acc_ref)

        a = w_ref[...]
        c = x_ref[...]
        if mxu_dtype is not None:
            a = a.astype(mxu_dtype)
            c = c.astype(mxu_dtype)
        acc_ref[...] += jnp.dot(a, c, preferred_element_type=jnp.float32)

        @pl.when(k == pl.num_programs(2) - 1)
        def _():
            o_ref[...] = (acc_ref[...] + b_ref[...]).astype(o_ref.dtype)

    return kernel


# -----------------------------------------------------------------------------
# Wrapper
# -----------------------------------------------------------------------------
def mm_add(w, x, b, *, out_dtype=None, use_bf16_mxu=None):
    """Compute w @ x + b (b broadcast over rows of the product)."""
    M, K = w.shape
    Kx, N = x.shape
    assert K == Kx, "inner dims must match"
    b2 = jnp.asarray(b).reshape(1, N)

    if out_dtype is None:
        out_dtype = jnp.result_type(w.dtype, x.dtype)

    # ---- small path: gridless, whole arrays in VMEM, zero wrapper ops -------
    approx_bytes = (w.size * w.dtype.itemsize + x.size * x.dtype.itemsize
                    + M * N * 4 + N * 4)
    if approx_bytes <= 2 * 1024 * 1024:
        return pl.pallas_call(
            _mm_bias_small_kernel,
            out_shape=jax.ShapeDtypeStruct((M, N), out_dtype),
            in_specs=[
                pl.BlockSpec(memory_space=pltpu.MemorySpace.VMEM),
                pl.BlockSpec(memory_space=pltpu.MemorySpace.VMEM),
                pl.BlockSpec(memory_space=pltpu.MemorySpace.VMEM),
            ],
            out_specs=pl.BlockSpec(memory_space=pltpu.MemorySpace.VMEM),
        )(w, x, b2)

    # ---- tiled path ----------------------------------------------------------
    if use_bf16_mxu is None:
        # Preserve the module's f32 semantics by default; the bf16 MXU fast
        # path auto-enables only when the inputs are already half precision.
        use_bf16_mxu = (w.dtype == jnp.bfloat16 and x.dtype == jnp.bfloat16)
    mxu_dtype = jnp.bfloat16 if (use_bf16_mxu and w.dtype != jnp.bfloat16) else None

    m_align = 16 if use_bf16_mxu else 8  # bf16 sublane packing needs 16 rows
    Mp = _round_up(M, m_align)
    Kp = _round_up(K, 128)
    Np = _round_up(N, 128)

    w_p = jnp.pad(w, ((0, Mp - M), (0, Kp - K))) if (Mp, Kp) != (M, K) else w
    x_p = jnp.pad(x, ((0, Kp - K), (0, Np - N))) if (Kp, Np) != (K, N) else x
    b_p = jnp.pad(b2, ((0, 0), (0, Np - N))) if Np != N else b2

    # Tiles: biggest exact divisors (no re-padding of the operands in HBM).
    tm = _pick_tile(Mp, (512, 384, 256, 128, 64, 32, 16, 8))
    tn = _pick_tile(Np, (512, 384, 256, 128))
    tk = _pick_tile(Kp, (1024, 768, 512, 384, 256, 128))

    # Guarantee >=2 blocks on a parallel axis so both v7x TensorCores get work.
    if Mp // tm == 1 and Np // tn == 1:
        if tn >= 256:
            tn //= 2
        elif tm >= 2 * m_align:
            tm //= 2

    gm, gn, gk = Mp // tm, Np // tn, Kp // tk
    if gn >= gm:
        # Larger parallel extent leads the grid (megacore sharding).
        grid = (gn, gm, gk)
        w_map = lambda j, i, k: (i, k)
        x_map = lambda j, i, k: (k, j)
        b_map = lambda j, i, k: (0, j)
        o_map = lambda j, i, k: (i, j)
    else:
        grid = (gm, gn, gk)
        w_map = lambda i, j, k: (i, k)
        x_map = lambda i, j, k: (k, j)
        b_map = lambda i, j, k: (0, j)
        o_map = lambda i, j, k: (i, j)

    acc_into_out = jnp.dtype(out_dtype) == jnp.dtype(jnp.float32)
    scratch = [] if acc_into_out else [pltpu.VMEM((tm, tn), jnp.float32)]

    cost = pl.CostEstimate(
        flops=2 * Mp * Kp * Np,
        transcendentals=0,
        bytes_accessed=(Mp * Kp * w_p.dtype.itemsize
                        + Kp * Np * x_p.dtype.itemsize
                        + Mp * Np * jnp.dtype(out_dtype).itemsize
                        + Np * b_p.dtype.itemsize),
    )

    out_p = pl.pallas_call(
        _make_tiled_kernel(mxu_dtype, acc_into_out),
        out_shape=jax.ShapeDtypeStruct((Mp, Np), out_dtype),
        grid_spec=pltpu.PrefetchScalarGridSpec(
            num_scalar_prefetch=0,
            grid=grid,
            in_specs=[
                _in_spec((tm, tk), w_map, nbuf=3),   # 3-deep: hides DMA on v5e
                _in_spec((tk, tn), x_map, nbuf=3),
                pl.BlockSpec((1, tn), b_map),
            ],
            out_specs=pl.BlockSpec((tm, tn), o_map),
            scratch_shapes=scratch,
        ),
        compiler_params=pltpu.CompilerParams(
            dimension_semantics=("parallel", "parallel", "arbitrary"),
            vmem_limit_bytes=_vmem_limit_bytes(),
        ),
        cost_estimate=cost,
    )(w_p, x_p, b_p)

    return out_p[:M, :N] if (Mp, Np) != (M, N) else out_p


if __name__ == "__main__":
    key = jax.random.PRNGKey(0)
    kw, kx, kb = jax.random.split(key, 3)

    # Small, consistent shapes preserving the module's semantics (mm + bias).
    M, K, N = 16, 32, 8
    w = jax.random.normal(kw, (M, K), dtype=jnp.float32)
    x = jax.random.normal(kx, (K, N), dtype=jnp.float32)
    b = jax.random.normal(kb, (N,), dtype=jnp.float32)

    out = mm_add(w, x, b)
    jax.block_until_ready(out)

    ref = w @ x + b
    assert out.shape == (M, N)
    assert jnp.allclose(out, ref, atol=1e-5, rtol=1e-5), "small-path mismatch"

    # Sanity-check the tiled (pipelined) path once as well.
    M2, K2, N2 = 512, 1024, 640
    w2 = jax.random.normal(kw, (M2, K2), dtype=jnp.float32)
    x2 = jax.random.normal(kx, (K2, N2), dtype=jnp.float32)
    b2 = jax.random.normal(kb, (N2,), dtype=jnp.float32)
    out2 = mm_add(w2, x2, b2)
    jax.block_until_ready(out2)
    ref2 = jnp.dot(w2, x2, precision=jax.lax.Precision.HIGHEST) + b2
    assert out2.shape == (M2, N2)
    assert jnp.allclose(out2, ref2, atol=1e-1, rtol=2e-2), "tiled-path mismatch"

    print("KERNEL_OK")
</pallas_src>

<mosaic_0001>
module attributes {stable_mosaic.version = 11 : i64} {
  func.func @_mm_bias_small_kernel(%arg0: memref<16x32xf32, #tpu.memory_space<vmem>>, %arg1: memref<32x8xf32, #tpu.memory_space<vmem>>, %arg2: memref<1x8xf32, #tpu.memory_space<vmem>>, %arg3: memref<16x8xf32, #tpu.memory_space<vmem>>) attributes {dimension_semantics = [], scalar_prefetch = 0 : i64, scratch_operands = 0 : i64, tpu.core_type = #tpu.core_type<tc>} {
    %c0 = arith.constant 0 : index
    %c0_0 = arith.constant 0 : index
    %0 = vector.load %arg0[%c0, %c0_0] : memref<16x32xf32, #tpu.memory_space<vmem>>, vector<16x32xf32>
    %c0_1 = arith.constant 0 : index
    %c0_2 = arith.constant 0 : index
    %1 = vector.load %arg1[%c0_1, %c0_2] : memref<32x8xf32, #tpu.memory_space<vmem>>, vector<32x8xf32>
    %cst = arith.constant dense<0.000000e+00> : vector<16x8xf32>
    %2 = tpu.matmul %0, %1, %cst {dimension_numbers = #tpu.dot_dimension_numbers<[1], [0], [0], [1], [0, 0, 1, 1], [], []>} : vector<16x32xf32>, vector<32x8xf32>, vector<16x8xf32> -> vector<16x8xf32>
    %c0_3 = arith.constant 0 : index
    %c0_4 = arith.constant 0 : index
    %3 = vector.load %arg2[%c0_3, %c0_4] : memref<1x8xf32, #tpu.memory_space<vmem>>, vector<1x8xf32>
    %4 = vector.broadcast %3 : vector<1x8xf32> to vector<16x8xf32>
    %5 = arith.addf %2, %4 : vector<16x8xf32>
    %c0_5 = arith.constant 0 : index
    %c0_6 = arith.constant 0 : index
    %6 = vector.load %arg3[%c0_5, %c0_6] : memref<16x8xf32, #tpu.memory_space<vmem>>, vector<16x8xf32>
    tpu.vector_store %arg3[%c0_5, %c0_6], %5 {strides = array<i32>} : memref<16x8xf32, #tpu.memory_space<vmem>>, vector<16x8xf32>,
    return
  }
}

</mosaic_0001>

<bundles_post_ra>
// kernel: tpu_custom_call.1
= control target key start
LH: loop header
LB: loop body
LE: loop exit
PB: predicated region body
PF: predicated region fallthrough
CT: control target
= control target key end

     0   :  { %vm27_vm0 = vcmask 261120   ;;  %vm109_vm1 = vcmask 64512   ;;  %s185_s1 = inlined_call_operand.vmem [shape: f32[32,8], index: 1, kind: input, shape index: {}]   ;;  %s186_s0 = inlined_call_operand.vmem [shape: f32[16,32], index: 0, kind: input, shape index: {}]   ;;  %s187_s2 = inlined_call_operand.vmem [shape: f32[1,8], index: 2, kind: input, shape index: {}]   ;;  %s188_s3 = inlined_call_operand.vmem [shape: f32[16,8], index: 3, kind: output, shape index: {}]  }
   0x1   :  { %v19_v0 = vld [vmem:[%s185_s1 + $0x18] sm:$0xff]  ;;  %v18_v1 = vld [vmem:[%s185_s1 + $0x10] sm:$0xff]  ;;  %v14_v2 = vld [vmem:[%s186_s0] sm:$0xff] }
   0x2   :  { %125 = vmatprep.subr.mxu0 %v19_v0  ;;  %v17_v3 = vld [vmem:[%s185_s1 + $0x8] sm:$0xff]  ;;  %133 = vmatprep.mubr.msk.f32.mxu0 %vm27_vm0, %v14_v2  ;;  %v16_v4 = vld [vmem:[%s185_s1] sm:$0xff] }
   0x3   :  { %126 = vmatpush3.msra.mxu0 %v19_v0  ;;  %v15_v5 = vld [vmem:[%s186_s0 + $0x8] sm:$0xff]  ;;  %v116_v6 = vld [vmem:[%s187_s2] ss:$0 sm:$0xff] }
   0x4   :  { %127 = vmatprep.subr.mxu0 %v18_v1 }
   0x5   :  { %128 = vmatpush3.msra.mxu0 %v18_v1 }
   0x6   :  { %129 = vmatprep.subr.mxu0 %v17_v3 }
   0x7   :  { %130 = vmatpush3.msra.mxu0 %v17_v3 }
   0x8   :  { %131 = vmatprep.subr.mxu0 %v16_v4 }
   0x9   :  { %132 = vmatpush3.msra.mxu0 %v16_v4 }
   0xa   :  { %134 = vmatmul.mubr.msk.f32.vlgmr.msra.gmra.mxu0 %vm27_vm0, %v15_v5 }
  0xca   :  { %v135_v7 = vpop.f32.mrf.mxu0 }
  0xcb   :  { %v106_v8 = vadd.f32 %v135_v7, %v116_v6 }
  0xcc   :  { %v100_v9 = vpop.f32.mrf.mxu0 }
  0xcd   :  { %111 = vst.msk [vmem:[%s188_s3 + $0x8] sm:$0xff] %vm109_vm1, %v106_v8  ;;  %v101_v10 = vadd.f32 %v116_v6, %v100_v9 }
  0xcf   :  { %110 = vst.msk [vmem:[%s188_s3] sm:$0xff] %vm109_vm1, %v101_v10 }

</bundles_post_ra>
